<compile_context>
chip_gen: v5e
topology: v5e:2x2
jax: 0.10.0
libtpu: 0.0.40
codegen_flags: <defaults>
</compile_context>

<pallas_src>
import functools

import jax
import jax.numpy as jnp
from jax.experimental import pallas as pl
from jax.experimental.pallas import tpu as pltpu

LANES = 128  # last dim of every block maps onto the 128-lane axis


def _cdiv(a, b):
    return -(-a // b)


def _round_up(a, b):
    return _cdiv(a, b) * b


def _chip_defaults():
    """Return (ncores, max_tile_rows) tuned per TPU generation."""
    try:
        kind = jax.devices()[0].device_kind.lower()
    except Exception:
        kind = ""
    # Two TensorCores can share the 'parallel' grid axis on v4/v5p (megacore)
    # and v7x; v5e/v6e are single-TC, where a 2-way split is just a longer loop.
    ncores = 2 if any(t in kind for t in ("v4", "v5p", "v7")) else 1
    # v5e scoped-VMEM default is 16 MiB -> 1 MiB/input blocks; v6e/v7x default
    # 32 MiB -> 2 MiB/input blocks (2 inputs x 2 pipeline buffers = 8 MiB).
    is_v5e = ("v5e" in kind) or ("v5 lite" in kind) or ("v5litepod" in kind)
    max_tile_rows = 2048 if is_v5e else 4096
    return ncores, max_tile_rows


def _focal_terms(x, y, gamma, alpha):
    """Per-element focal loss, in-kernel (VALU/EUP-lean) version.

    Assumes binary targets y in {0,1} (as the module's docstring states),
    which turns the p_t / alpha_factor blends into selects.
    """
    e = jnp.exp(-jnp.abs(x))                               # EUP, reused below
    bce = jnp.maximum(x, 0.0) - x * y + jnp.log1p(e)       # stable BCEWithLogits
    r = pl.reciprocal(1.0 + e, approx=True)                # EUP, not a VALU divide
    p = jnp.where(x >= 0.0, r, e * r)                      # sigmoid(x), no 2nd exp
    q = jnp.where(y != 0.0, 1.0 - p, p)                    # q = 1 - p_t
    af = jnp.where(y != 0.0, alpha, 1.0 - alpha)           # constants fold
    if gamma == 2:
        mod = q * q                                        # avoid pow for gamma==2
    else:
        mod = jnp.maximum(q, 0.0) ** gamma
    return bce * (af * mod)


def _focal_loss_kernel(pred_ref, true_ref, out_ref, *, gamma, alpha, rows,
                       tile_r, inner_blocks, acc_rows, first_masked_block,
                       needs_mask):
    i = pl.program_id(1)

    # out_ref is this core's (acc_rows, LANES) partial-sum block; its BlockSpec
    # returns the same block index across the 'arbitrary' axis, so it stays
    # VMEM-resident for the whole reduction -> accumulate straight into it.
    @pl.when(i == 0)
    def _():
        out_ref[...] = jnp.zeros_like(out_ref)

    x = pred_ref[...].astype(jnp.float32)
    y = true_ref[...].astype(jnp.float32)

    def partial_sum(v):
        # Fold (tile_r, 128) onto (acc_rows, 128): acc_rows/8 independent vreg
        # accumulator chains (VPU ILP), no cross-lane work per grid step.
        return v.reshape(-1, acc_rows, LANES).sum(axis=0)

    if not needs_mask:
        out_ref[...] += partial_sum(_focal_terms(x, y, gamma, alpha))
    else:
        flat_block = pl.program_id(0) * inner_blocks + i
        base_row = flat_block * tile_r

        @pl.when(flat_block < first_masked_block)
        def _():
            out_ref[...] += partial_sum(_focal_terms(x, y, gamma, alpha))

        # At most one real partial block: mask rows past the end of the array.
        # Blocks entirely past the end (phantoms from core rounding) are
        # skipped: no transcendentals, no accumulate.
        @pl.when(jnp.logical_and(flat_block >= first_masked_block,
                                 base_row < rows))
        def _():
            row = base_row + jax.lax.broadcasted_iota(jnp.int32, x.shape, 0)
            valid = row < rows
            xm = jnp.where(valid, x, 0.0)   # scrub Pallas's unspecified padding
            ym = jnp.where(valid, y, 0.0)
            loss = jnp.where(valid, _focal_terms(xm, ym, gamma, alpha), 0.0)
            out_ref[...] += partial_sum(loss)


def _focal_elementwise(x, y, gamma, alpha):
    """Pure-JAX per-element focal loss (tail epilogue / reference)."""
    bce = jnp.maximum(x, 0.0) - x * y + jnp.log1p(jnp.exp(-jnp.abs(x)))
    p = jax.nn.sigmoid(x)
    p_t = y * p + (1.0 - y) * (1.0 - p)
    af = y * alpha + (1.0 - y) * (1.0 - alpha)
    return bce * af * (1.0 - p_t) ** gamma


def focal_loss(pred, true, gamma=2, alpha=0.25, *, ncores=None, max_tile_rows=None):
    """Binary focal loss with reduction='sum' (matches the PyTorch FocalLoss)."""
    assert pred.shape == true.shape
    n = int(pred.size)
    if n == 0:
        return jnp.float32(0.0)

    d_ncores, d_max_tile = _chip_defaults()
    ncores = d_ncores if ncores is None else ncores
    max_tile_rows = d_max_tile if max_tile_rows is None else max_tile_rows

    pred_f = jnp.ravel(pred)
    true_f = jnp.ravel(true)

    rows = n // LANES      # complete 128-lane rows handled by the Pallas kernel
    main_n = rows * LANES  # contiguous prefix; no padded copy is ever made

    total = jnp.float32(0.0)

    if rows >= 8:
        # Sublane granularity of the row dim depends on the narrowest input
        # dtype (f32 -> 8, bf16 -> 16, int8/bool -> 32).  bf16/int8 targets can
        # be passed as-is to halve/quarter HBM traffic; the kernel upcasts.
        sub = 8
        for a in (pred_f, true_f):
            sub = max(sub, 32 // jnp.dtype(a.dtype).itemsize)

        rows_per_core = max(1, _cdiv(rows, ncores))
        inner_blocks = _cdiv(rows_per_core, max_tile_rows)
        tile_r = _round_up(_cdiv(rows_per_core, inner_blocks), sub)
        num_blocks = ncores * inner_blocks
        acc_rows = 32 if tile_r % 32 == 0 else (16 if tile_r % 16 == 0 else 8)
        first_masked_block = rows // tile_r
        needs_mask = num_blocks * tile_r > rows
        last_valid_block = (rows - 1) // tile_r  # clamp target for phantom blocks

        pred2 = pred_f[:main_n].reshape(rows, LANES)
        true2 = true_f[:main_n].reshape(rows, LANES)

        def in_map(c, i):
            # Clamp so a block whose origin would fall entirely past the array
            # re-reads the last valid block (its compute is skipped in-kernel).
            return (jnp.minimum(c * inner_blocks + i, last_valid_block), 0)

        kernel = functools.partial(
            _focal_loss_kernel, gamma=gamma, alpha=alpha, rows=rows,
            tile_r=tile_r, inner_blocks=inner_blocks, acc_rows=acc_rows,
            first_masked_block=first_masked_block, needs_mask=needs_mask)

        partial = pl.pallas_call(
            kernel,
            out_shape=jax.ShapeDtypeStruct((ncores * acc_rows, LANES), jnp.float32),
            grid_spec=pltpu.PrefetchScalarGridSpec(
                num_scalar_prefetch=0,
                grid=(ncores, inner_blocks),
                in_specs=[pl.BlockSpec((tile_r, LANES), in_map),
                          pl.BlockSpec((tile_r, LANES), in_map)],
                out_specs=pl.BlockSpec((acc_rows, LANES), lambda c, i: (c, 0)),
            ),
            compiler_params=pltpu.CompilerParams(
                dimension_semantics=("parallel", "arbitrary")),
        )(pred2, true2)

        # Single cheap cross-lane reduce of the lane-dense partial-sum slab.
        total = total + jnp.sum(partial)
        tail_start = main_n
    else:
        tail_start = 0

    if tail_start < n:
        # <128 leftover elements (or everything, for tiny inputs): pure JAX.
        xt = pred_f[tail_start:].astype(jnp.float32)
        yt = true_f[tail_start:].astype(jnp.float32)
        total = total + jnp.sum(_focal_elementwise(xt, yt, gamma, alpha))

    return total


def focal_loss_ref(pred, true, gamma=2, alpha=0.25):
    """Pure-JAX reference mirroring the PyTorch forward."""
    x = jnp.ravel(pred).astype(jnp.float32)
    y = jnp.ravel(true).astype(jnp.float32)
    return jnp.sum(_focal_elementwise(x, y, gamma, alpha))


if __name__ == "__main__":
    key = jax.random.PRNGKey(0)
    k1, k2, k3, k4, k5, k6 = jax.random.split(key, 6)

    # Tolerances reflect the deliberate approx-reciprocal sigmoid (~1e-4 rel).

    # 1) Block-aligned NCHW logits / binary targets (clean no-mask path).
    shape = (2, 4, 16, 16)                       # 2048 elems = 16 x 128
    pred = jax.random.normal(k1, shape, dtype=jnp.float32) * 2.0
    true = jax.random.bernoulli(k2, 0.3, shape).astype(jnp.float32)
    out = jax.block_until_ready(focal_loss(pred, true))
    ref = focal_loss_ref(pred, true)
    assert jnp.allclose(out, ref, rtol=2e-3, atol=1e-2), (out, ref)

    # 2) Ragged shape: exercises the in-kernel partial-block row mask and the
    #    <128-element pure-JAX tail (no full-array pad copy is made).
    shape2 = (3, 5, 7, 11)                       # 1155 elems
    pred2 = jax.random.normal(k3, shape2, dtype=jnp.float32) * 2.0
    true2 = jax.random.bernoulli(k4, 0.3, shape2).astype(jnp.float32)
    out2 = jax.block_until_ready(focal_loss(pred2, true2))
    ref2 = focal_loss_ref(pred2, true2)
    assert jnp.allclose(out2, ref2, rtol=2e-3, atol=1e-2), (out2, ref2)

    # 3) Multi-block accumulation path (small max_tile_rows override so the
    #    grid has several steps per core without a huge input).
    shape3 = (2, 8, 64, 64)                      # 65536 elems = 512 x 128
    pred3 = jax.random.normal(k5, shape3, dtype=jnp.float32) * 2.0
    true3 = jax.random.bernoulli(k6, 0.3, shape3).astype(jnp.float32)
    out3 = jax.block_until_ready(focal_loss(pred3, true3, max_tile_rows=128))
    ref3 = focal_loss_ref(pred3, true3)
    assert jnp.allclose(out3, ref3, rtol=2e-3, atol=1e-2), (out3, ref3)

    print("KERNEL_OK")
</pallas_src>

<mosaic_0001>
module attributes {stable_mosaic.version = 11 : i64} {
  func.func @_focal_loss_kernel(%arg0: i32, %arg1: i32, %arg2: memref<16x128xf32, #tpu.memory_space<vmem>>, %arg3: memref<16x128xf32, #tpu.memory_space<vmem>>, %arg4: memref<16x128xf32, #tpu.memory_space<vmem>>) attributes {dimension_semantics = [#tpu.dimension_semantics<parallel>, #tpu.dimension_semantics<arbitrary>], iteration_bounds = array<i64: 1, 1>, scalar_prefetch = 0 : i64, scratch_operands = 0 : i64, tpu.core_type = #tpu.core_type<tc>, window_params = [{transform_indices = @transform_0, window_bounds = array<i64: 16, 128>}, {transform_indices = @transform_1, window_bounds = array<i64: 16, 128>}, {transform_indices = @transform_2, window_bounds = array<i64: 16, 128>}]} {
    %c0_i32 = arith.constant 0 : i32
    %0 = arith.cmpi eq, %arg1, %c0_i32 : i32
    %1 = arith.extui %0 : i1 to i32
    %c0_i32_0 = arith.constant 0 : i32
    %2 = arith.cmpi ne, %1, %c0_i32_0 : i32
    scf.if %2 {
      %cst_17 = arith.constant 0.000000e+00 : f32
      %40 = vector.broadcast %cst_17 : f32 to vector<16x128xf32>
      %c0_18 = arith.constant 0 : index
      %c0_19 = arith.constant 0 : index
      %41 = vector.load %arg4[%c0_18, %c0_19] : memref<16x128xf32, #tpu.memory_space<vmem>>, vector<16x128xf32>
      tpu.vector_store %arg4[%c0_18, %c0_19], %40 {strides = array<i32>} : memref<16x128xf32, #tpu.memory_space<vmem>>, vector<16x128xf32>,
    } else {
    }
    %c0 = arith.constant 0 : index
    %c0_1 = arith.constant 0 : index
    %3 = vector.load %arg2[%c0, %c0_1] : memref<16x128xf32, #tpu.memory_space<vmem>>, vector<16x128xf32>
    %c0_2 = arith.constant 0 : index
    %c0_3 = arith.constant 0 : index
    %4 = vector.load %arg3[%c0_2, %c0_3] : memref<16x128xf32, #tpu.memory_space<vmem>>, vector<16x128xf32>
    %c0_4 = arith.constant 0 : index
    %c0_5 = arith.constant 0 : index
    %5 = vector.load %arg4[%c0_4, %c0_5] : memref<16x128xf32, #tpu.memory_space<vmem>>, vector<16x128xf32>
    %6 = math.absf %3 : vector<16x128xf32>
    %cst = arith.constant 0.000000e+00 : f32
    %7 = vector.broadcast %cst : f32 to vector<16x128xf32>
    %8 = arith.subf %7, %6 : vector<16x128xf32>
    %9 = math.exp %8 : vector<16x128xf32>
    %cst_6 = arith.constant 0.000000e+00 : f32
    %10 = vector.broadcast %cst_6 : f32 to vector<16x128xf32>
    %11 = arith.maximumf %3, %10 : vector<16x128xf32>
    %12 = arith.mulf %3, %4 : vector<16x128xf32>
    %13 = arith.subf %11, %12 : vector<16x128xf32>
    %14 = math.log1p %9 : vector<16x128xf32>
    %15 = arith.addf %13, %14 : vector<16x128xf32>
    %cst_7 = arith.constant 1.000000e+00 : f32
    %16 = vector.broadcast %cst_7 : f32 to vector<16x128xf32>
    %17 = arith.addf %16, %9 : vector<16x128xf32>
    %18 = tpu.reciprocal %17 {approx = true} : vector<16x128xf32> -> vector<16x128xf32>
    %cst_8 = arith.constant 0.000000e+00 : f32
    %19 = vector.broadcast %cst_8 : f32 to vector<16x128xf32>
    %20 = arith.cmpf oge, %3, %19 : vector<16x128xf32>
    %21 = arith.mulf %9, %18 : vector<16x128xf32>
    %22 = arith.select %20, %18, %21 : vector<16x128xi1>, vector<16x128xf32>
    %cst_9 = arith.constant 0.000000e+00 : f32
    %23 = vector.broadcast %cst_9 : f32 to vector<16x128xf32>
    %24 = arith.cmpf one, %4, %23 : vector<16x128xf32>
    %cst_10 = arith.constant 1.000000e+00 : f32
    %25 = vector.broadcast %cst_10 : f32 to vector<16x128xf32>
    %26 = arith.subf %25, %22 : vector<16x128xf32>
    %27 = arith.select %24, %26, %22 : vector<16x128xi1>, vector<16x128xf32>
    %cst_11 = arith.constant 0.000000e+00 : f32
    %28 = vector.broadcast %cst_11 : f32 to vector<16x128xf32>
    %29 = arith.cmpf one, %4, %28 : vector<16x128xf32>
    %cst_12 = arith.constant 2.500000e-01 : f32
    %cst_13 = arith.constant 7.500000e-01 : f32
    %30 = vector.broadcast %cst_12 : f32 to vector<16x128xf32>
    %31 = vector.broadcast %cst_13 : f32 to vector<16x128xf32>
    %32 = arith.select %29, %30, %31 : vector<16x128xi1>, vector<16x128xf32>
    %33 = arith.mulf %27, %27 : vector<16x128xf32>
    %34 = arith.mulf %32, %33 : vector<16x128xf32>
    %35 = arith.mulf %15, %34 : vector<16x128xf32>
    %36 = vector.shape_cast %35 : vector<16x128xf32> to vector<1x16x128xf32>
    %cst_14 = arith.constant dense<0.000000e+00> : vector<16x128xf32>
    %37 = vector.multi_reduction <add>, %36, %cst_14 [0] : vector<1x16x128xf32> to vector<16x128xf32>
    %38 = arith.addf %5, %37 : vector<16x128xf32>
    %c0_15 = arith.constant 0 : index
    %c0_16 = arith.constant 0 : index
    %39 = vector.load %arg4[%c0_15, %c0_16] : memref<16x128xf32, #tpu.memory_space<vmem>>, vector<16x128xf32>
    tpu.vector_store %arg4[%c0_15, %c0_16], %38 {strides = array<i32>} : memref<16x128xf32, #tpu.memory_space<vmem>>, vector<16x128xf32>,
    return
  }
  func.func @transform_0(%arg0: i32, %arg1: i32) -> (i32, i32) {
    %c1_i32 = arith.constant 1 : i32
    %0 = arith.muli %arg0, %c1_i32 : i32
    %1 = arith.addi %0, %arg1 : i32
    %c0_i32 = arith.constant 0 : i32
    %2 = arith.minsi %1, %c0_i32 : i32
    %c0_i32_0 = arith.constant 0 : i32
    %c0_i32_1 = arith.constant 0 : i32
    return %2, %c0_i32_0 : i32, i32
  }
  func.func @transform_1(%arg0: i32, %arg1: i32) -> (i32, i32) {
    %c1_i32 = arith.constant 1 : i32
    %0 = arith.muli %arg0, %c1_i32 : i32
    %1 = arith.addi %0, %arg1 : i32
    %c0_i32 = arith.constant 0 : i32
    %2 = arith.minsi %1, %c0_i32 : i32
    %c0_i32_0 = arith.constant 0 : i32
    %c0_i32_1 = arith.constant 0 : i32
    return %2, %c0_i32_0 : i32, i32
  }
  func.func @transform_2(%arg0: i32, %arg1: i32) -> (i32, i32) {
    %c0_i32 = arith.constant 0 : i32
    %c0_i32_0 = arith.constant 0 : i32
    return %arg0, %c0_i32 : i32, i32
  }
}

</mosaic_0001>

<bundles_post_ra>
// kernel: tpu_custom_call.1
= control target key start
LH: loop header
LB: loop body
LE: loop exit
PB: predicated region body
PF: predicated region fallthrough
CT: control target
= control target key end

     0   :  { %7 = vsyncpa [#allocation3], 0  ;;  %s312_s0 = inlined_call_operand.hbm [shape: f32[16,128], index: 0, kind: input, shape index: {}]   ;;  %s313_s1 = inlined_call_operand.hbm [shape: f32[16,128], index: 1, kind: input, shape index: {}]   ;;  %s314_s2 = inlined_call_operand.hbm [shape: f32[16,128], index: 2, kind: output, shape index: {}]  }
   0x1   :  { %8 = vsyncpa [#allocation6], 0 }
   0x2   :  { %9 = vsyncpa [#allocation4], 0  ;;  %s20_s11 = sshll.u32 %s312_s0, 4  ;;  %s261_s12 = smov [#allocation2]   ;;  %s21_s11 = int_to_ptr.hbm [resolvable:$true] %s20_s11 }
   0x3   :  { %s22_s13 = sshll.u32 %s261_s12, 4  ;;  %s39_s16 = sshll.u32 %s313_s1, 4  ;;  %s23_s13 = int_to_ptr.vmem [resolvable:$true] %s22_s13  ;;  %s40_s16 = int_to_ptr.hbm [resolvable:$true] %s39_s16 }
   0x4   :  { %s262_s17 = smov 128   ;;  %s263_s18 = smov 8  }
   0x5   :  { %28 = dma.hbm_to_vmem [thread:$0]  %s21_s11, 256, %s23_s13, [#allocation3], %s262_s17, %s262_s17, %s263_s18  }
   0x6   :  { %s264_s19 = smov [#allocation5]  }
   0x7   :  { %s41_s20 = sshll.u32 %s264_s19, 4  ;;  %s42_s20 = int_to_ptr.vmem [resolvable:$true] %s41_s20 }
   0x8   :  { %47 = dma.hbm_to_vmem [thread:$0]  %s40_s16, 256, %s42_s20, [#allocation6], %s262_s17, %s262_s17, %s263_s18  }
   0x9   :  { %255 = dma.done.wait [#allocation3], 256  }
   0xa   :  { %256 = vsyncadd [#allocation3], 4294967040 }
   0xb   :  { %257 = dma.done.wait [#allocation6], 256  }
   0xc   :  { %258 = vsyncadd [#allocation6], 4294967040  ;;  %v70_v0 = vld [vmem:[#allocation2] sm:$0xff]  ;;  %v71_v1 = vld [vmem:[#allocation2 + $0x8] sm:$0xff]  ;;  %v265_v43 = vmov 0.75   ;;  %s266_s0 = smov [#allocation7]  }
   0xd   :  { %v76_v2 = vand.u32 2147483647, %v70_v0  ;;  %v77_v3 = vand.u32 2147483647, %v71_v1  ;;  %v72_v14 = vld [vmem:[#allocation5] sm:$0xff]  ;;  %v73_v17 = vld [vmem:[#allocation5 + $0x8] sm:$0xff] }
   0xe   :  { %v84_v20 = vmax.f32 %v70_v0, 0.0  ;;  %v86_v21 = vmul.f32 %v72_v14, %v70_v0  ;;  %vm114_vm0 = vcmp.ge.f32.partialorder %v70_v0, 0.0  ;;  %v85_v29 = vmax.f32 %v71_v1, 0.0  ;;  %s144_s1 = sshll.u32 %s266_s0, 4  ;;  %s146_s23 = sshll.u32 %s314_s2, 4  ;;  %s145_s1 = int_to_ptr.vmem [resolvable:$true] %s144_s1  ;;  %s147_s23 = int_to_ptr.hbm [resolvable:$true] %s146_s23 }
   0xf   :  { %v78_v4 = vsub.f32 0.0, %v76_v2  ;;  %v79_v5 = vsub.f32 0.0, %v77_v3  ;;  %v87_v30 = vmul.f32 %v73_v17, %v71_v1  ;;  %vm120_vm2 = vcmp.ne.f32.partialorder %v72_v14, 0.0 }
  0x10   :  { %vm115_vm3 = vcmp.ge.f32.partialorder %v71_v1, 0.0  ;;  %v88_v34 = vsub.f32 %v84_v20, %v86_v21  ;;  %vm121_vm5 = vcmp.ne.f32.partialorder %v73_v17, 0.0  ;;  %v126_v44 = vsel %vm120_vm2, 0.25, %v265_v43 }
  0x11   :  { %v80_v6 = vmul.f32 1.442695, %v78_v4  ;;  %v82_v7 = vmul.f32 1.442695, %v79_v5  ;;  %v89_v40 = vsub.f32 %v85_v29, %v87_v30  ;;  %v127_v50 = vsel %vm121_vm5, 0.25, %v265_v43 }
  0x13   :  { %171 = vpow2.f32 %v80_v6 }
  0x14   :  { %173 = vpow2.f32 %v82_v7 }
  0x19   :  { %v172_v8 = vpop.eup %171 }
  0x1a   :  { %v174_v9 = vpop.eup %173  ;;  %v90_v10 = vadd.f32 1.0, %v172_v8  ;;  %v93_v11 = vmul.f32 -0.5, %v172_v8  ;;  %v96_v16 = vand.u32 2147483647, %v172_v8 }
  0x1b   :  { %v99_v12 = vadd.f32 1.0, %v174_v9  ;;  %v102_v13 = vmul.f32 -0.5, %v174_v9  ;;  %v105_v22 = vand.u32 2147483647, %v174_v9 }
  0x1c   :  { %175 = vlog2.f32 %v90_v10  ;;  %v94_v15 = vadd.f32 1.0, %v93_v11  ;;  %vm294_vm1 = vcmp.lt.f32.partialorder %v96_v16, 0.0004427343 }
  0x1d   :  { %177 = vrcp.f32 %v90_v10  ;;  %v103_v18 = vadd.f32 1.0, %v102_v13  ;;  %vm298_vm4 = vcmp.lt.f32.partialorder %v105_v22, 0.0004427343 }
  0x1e   :  { %179 = vlog2.f32 %v99_v12  ;;  %v95_v25 = vmul.f32 %v172_v8, %v94_v15 }
  0x1f   :  { %181 = vrcp.f32 %v99_v12  ;;  %v104_v33 = vmul.f32 %v174_v9, %v103_v18 }
  0x22   :  { %v176_v19 = vpop.eup %175 }
  0x23   :  { %v178_v23 = vpop.eup %177  ;;  %v92_v24 = vmul.f32 0.6931472, %v176_v19 }
  0x24   :  { %v180_v26 = vpop.eup %179  ;;  %v116_v28 = vmul.f32 %v178_v23, %v172_v8 }
  0x25   :  { %v182_v31 = vpop.eup %181  ;;  %v101_v32 = vmul.f32 0.6931472, %v180_v26  ;;  %v98_v38 = vsel %vm294_vm1, %v95_v25, %v92_v24 }
  0x26   :  { %v118_v35 = vsel %vm114_vm0, %v178_v23, %v116_v28  ;;  %v117_v37 = vmul.f32 %v182_v31, %v174_v9  ;;  %v108_v47 = vadd.f32 %v98_v38, %v88_v34 }
  0x27   :  { %v122_v39 = vsub.f32 1.0, %v118_v35  ;;  %v107_v45 = vsel %vm298_vm4, %v104_v33, %v101_v32 }
  0x28   :  { %v119_v41 = vsel %vm115_vm3, %v182_v31, %v117_v37  ;;  %v109_v52 = vadd.f32 %v107_v45, %v89_v40 }
  0x29   :  { %v124_v42 = vsel %vm120_vm2, %v122_v39, %v118_v35  ;;  %v123_v46 = vsub.f32 1.0, %v119_v41 }
  0x2a   :  { %v128_v48 = vmul.f32 %v124_v42, %v124_v42 }
  0x2b   :  { %v125_v49 = vsel %vm121_vm5, %v123_v46, %v119_v41 }
  0x2c   :  { %v130_v51 = vmul.f32 %v128_v48, %v126_v44  ;;  %v129_v53 = vmul.f32 %v125_v49, %v125_v49 }
  0x2e   :  { %v132_v54 = vmul.f32 %v130_v51, %v108_v47  ;;  %v131_v55 = vmul.f32 %v129_v53, %v127_v50 }
  0x30   :  { %v133_v56 = vmul.f32 %v131_v55, %v109_v52  ;;  %138 = vst [vmem:[#allocation7] sm:$0xff] %v132_v54 }
  0x32   :  { %139 = vst [vmem:[#allocation7 + $0x8] sm:$0xff] %v133_v56 }
  0x33   :  { %152 = dma.vmem_to_hbm [thread:$0]  %s145_s1, 256, %s147_s23, [#allocation4], %s262_s17, %s262_s17, %s263_s18  }
  0x34   :  { %259 = dma.done.wait [#allocation4], 256  }
  0x35   :  { %260 = vsyncadd [#allocation4], 4294967040 }
  0x36   :  { %157 = vsyncpa [#allocation3], 1 }
  0x37   :  { %158 = vsyncpa [#allocation6], 1 }
  0x38   :  { %159 = vsyncpa [#allocation4], 1 }

</bundles_post_ra>
